<compile_context>
chip_gen: v7x
topology: tpu7x:2x2x1
jax: 0.10.0
libtpu: 0.0.40
codegen_flags: <defaults>
</compile_context>

<pallas_src>
import functools

import jax
import jax.numpy as jnp
from jax.experimental import pallas as pl
from jax.experimental.pallas import tpu as pltpu


def critic_kernel(xa_ref,               # (4, tile)    [x ; a] transposed, batch on lanes
                  wenc_ref, benc_ref,   # (128, 4), (128, 1)  fused block-diag encoders
                  w1_ref, b1_ref,       # (32, 128), (32, 1)  q layer 1
                  w2_ref, b2_ref,       # (1, 32),  (1, 1)    q layer 2
                  out_ref):             # (1, tile)    lane-dense q output
    # Fused state+action encoder: Linear(4 -> 128) + ReLU (block-diagonal weight).
    emb = jnp.dot(wenc_ref[...], xa_ref[...], preferred_element_type=jnp.float32)
    emb = jnp.maximum(emb + benc_ref[...], 0.0)                      # (128, tile) f32

    # q estimator layer 1: Linear(128, 32) + ReLU.
    h = jnp.dot(w1_ref[...], emb.astype(w1_ref.dtype),
                preferred_element_type=jnp.float32)
    h = jnp.maximum(h + b1_ref[...], 0.0)                            # (32, tile) f32

    # q estimator layer 2: Linear(32, 1) + Identity; batch stays on the lane axis so
    # the final store is a dense (1, tile) vst.
    out_ref[...] = (jnp.dot(w2_ref[...], h.astype(w2_ref.dtype),
                            preferred_element_type=jnp.float32)
                    + b2_ref[...])                                   # (1, tile)


def critic_forward(x, a, params, *, tile_b=1024, compute_dtype=jnp.float32):
    """Fused Critic forward.  x: (B, 3) f32, a: (B, 1) f32.  Returns (B, 1) f32."""
    assert tile_b % 128 == 0, "tile_b must be a multiple of 128 (lane axis)"
    B = x.shape[0]
    (ws, bs, wa, ba, w1, b1, w2, b2) = params

    # ---- fuse the two encoders into one block-diagonal (4, 128) weight ----------
    d_s_in, d_s_out = ws.shape          # (3, 64)
    d_a_in, d_a_out = wa.shape          # (1, 64)
    d_in = d_s_in + d_a_in              # 4
    w_enc = jnp.zeros((d_in, d_s_out + d_a_out), jnp.float32)
    w_enc = w_enc.at[:d_s_in, :d_s_out].set(ws)
    w_enc = w_enc.at[d_s_in:, d_s_out:].set(wa)
    b_enc = jnp.concatenate([bs, ba], axis=-1)           # (1, 128)

    # ---- batch-on-lane layout: transpose the small weights once in the wrapper --
    wenc_t = w_enc.T.astype(compute_dtype)                # (128, 4)
    benc_t = b_enc.T                                       # (128, 1) f32
    w1_t = w1.T.astype(compute_dtype)                      # (32, 128)
    b1_t = b1.T                                            # (32, 1)  f32
    w2_t = w2.T.astype(compute_dtype)                      # (1, 32)
    # b2 stays (1, 1) f32

    # ---- batch tiling: single grid step for small batches, pad otherwise --------
    tile = min(tile_b, ((B + 127) // 128) * 128)           # multiple of 128
    B_pad = ((B + tile - 1) // tile) * tile
    grid = (B_pad // tile,)

    xa = jnp.concatenate([x, a], axis=-1)                  # (B, 4)
    if B_pad != B:
        xa = jnp.pad(xa, ((0, B_pad - B), (0, 0)))
    xa_t = xa.T.astype(compute_dtype)                      # (4, B_pad), batch on lanes

    batch_map = lambda i: (0, i)
    rep_map = lambda i: (0, 0)                              # constant -> stays resident
    full = lambda arr: pl.BlockSpec(arr.shape, rep_map)

    out = pl.pallas_call(
        critic_kernel,
        out_shape=jax.ShapeDtypeStruct((1, B_pad), jnp.float32),
        grid=grid,
        in_specs=[
            pl.BlockSpec((d_in, tile), batch_map),          # xa_t
            full(wenc_t), full(benc_t),
            full(w1_t), full(b1_t),
            full(w2_t), full(b2),
        ],
        out_specs=pl.BlockSpec((1, tile), batch_map),       # lane-dense output
        compiler_params=pltpu.CompilerParams(dimension_semantics=("parallel",)),
    )(xa_t, wenc_t, benc_t, w1_t, b1_t, w2_t, b2)

    return out[0, :B].reshape(B, 1)


def init_params(key):
    """Deterministic init mirroring Critic's three MLPs.

    Weights stored as (in, out):
      state_encoder:  Linear(3, 64)
      action_encoder: Linear(1, 64)
      q_estimator:    Linear(128, 32), Linear(32, 1)
    """
    ks = jax.random.split(key, 8)

    def lin(kw, kb, din, dout):
        bound = 1.0 / jnp.sqrt(jnp.float32(din))
        w = jax.random.uniform(kw, (din, dout), jnp.float32, -bound, bound)
        b = jax.random.uniform(kb, (1, dout), jnp.float32, -bound, bound)
        return w, b

    ws, bs = lin(ks[0], ks[1], 3, 64)
    wa, ba = lin(ks[2], ks[3], 1, 64)
    w1, b1 = lin(ks[4], ks[5], 128, 32)
    w2, b2 = lin(ks[6], ks[7], 32, 1)
    return (ws, bs, wa, ba, w1, b1, w2, b2)


def critic_reference(x, a, params):
    (ws, bs, wa, ba, w1, b1, w2, b2) = params
    s_emb = jnp.maximum(x @ ws + bs, 0.0)
    a_emb = jnp.maximum(a @ wa + ba, 0.0)
    emb = jnp.concatenate([s_emb, a_emb], axis=-1)
    h = jnp.maximum(emb @ w1 + b1, 0.0)
    return h @ w2 + b2


if __name__ == "__main__":
    key = jax.random.PRNGKey(0)
    k_p, k_x1, k_a1, k_x2, k_a2 = jax.random.split(key, 5)
    params = init_params(k_p)

    # Jit the wrapper so the concat/pad/transpose plumbing fuses with the pallas_call.
    fwd = jax.jit(critic_forward, static_argnames=("tile_b", "compute_dtype"))

    # Small batch: single grid step (batch padded to 128 lanes).
    B1 = 8
    x1 = jax.random.normal(k_x1, (B1, 3), jnp.float32)
    a1 = jax.random.normal(k_a1, (B1, 1), jnp.float32)
    q1 = jax.block_until_ready(fwd(x1, a1, params))
    assert q1.shape == (B1, 1)
    assert jnp.allclose(q1, critic_reference(x1, a1, params), atol=1e-5, rtol=1e-5)

    # Ragged batch, multi-step grid: exercises padding + per-tile lane-dense stores.
    B2 = 200
    x2 = jax.random.normal(k_x2, (B2, 3), jnp.float32)
    a2 = jax.random.normal(k_a2, (B2, 1), jnp.float32)
    q2 = jax.block_until_ready(fwd(x2, a2, params, tile_b=128))
    assert q2.shape == (B2, 1)
    assert jnp.allclose(q2, critic_reference(x2, a2, params), atol=1e-5, rtol=1e-5)

    print("KERNEL_OK")
</pallas_src>

<mosaic_0001>
module attributes {stable_mosaic.version = 11 : i64} {
  func.func @critic_kernel(%arg0: i32, %arg1: memref<4x128xf32, #tpu.memory_space<vmem>>, %arg2: memref<128x4xf32, #tpu.memory_space<vmem>>, %arg3: memref<128x1xf32, #tpu.memory_space<vmem>>, %arg4: memref<32x128xf32, #tpu.memory_space<vmem>>, %arg5: memref<32x1xf32, #tpu.memory_space<vmem>>, %arg6: memref<1x32xf32, #tpu.memory_space<vmem>>, %arg7: memref<1x1xf32, #tpu.memory_space<vmem>>, %arg8: memref<1x128xf32, #tpu.memory_space<vmem>>) attributes {dimension_semantics = [#tpu.dimension_semantics<parallel>], iteration_bounds = array<i64: 1>, scalar_prefetch = 0 : i64, scratch_operands = 0 : i64, tpu.core_type = #tpu.core_type<tc>, window_params = [{transform_indices = @transform_0, window_bounds = array<i64: 4, 128>}, {pipeline_mode = #tpu.pipeline_mode<synchronous>, transform_indices = @transform_1, window_bounds = array<i64: 128, 4>}, {pipeline_mode = #tpu.pipeline_mode<synchronous>, transform_indices = @transform_2, window_bounds = array<i64: 128, 1>}, {pipeline_mode = #tpu.pipeline_mode<synchronous>, transform_indices = @transform_3, window_bounds = array<i64: 32, 128>}, {pipeline_mode = #tpu.pipeline_mode<synchronous>, transform_indices = @transform_4, window_bounds = array<i64: 32, 1>}, {pipeline_mode = #tpu.pipeline_mode<synchronous>, transform_indices = @transform_5, window_bounds = array<i64: 1, 32>}, {pipeline_mode = #tpu.pipeline_mode<synchronous>, transform_indices = @transform_6, window_bounds = array<i64: 1, 1>}, {transform_indices = @transform_7, window_bounds = array<i64: 1, 128>}]} {
    %c0 = arith.constant 0 : index
    %c0_0 = arith.constant 0 : index
    %0 = vector.load %arg2[%c0, %c0_0] : memref<128x4xf32, #tpu.memory_space<vmem>>, vector<128x4xf32>
    %c0_1 = arith.constant 0 : index
    %c0_2 = arith.constant 0 : index
    %1 = vector.load %arg1[%c0_1, %c0_2] : memref<4x128xf32, #tpu.memory_space<vmem>>, vector<4x128xf32>
    %cst = arith.constant dense<0.000000e+00> : vector<128x128xf32>
    %2 = tpu.matmul %0, %1, %cst {dimension_numbers = #tpu.dot_dimension_numbers<[1], [0], [0], [1], [0, 0, 1, 1], [], []>} : vector<128x4xf32>, vector<4x128xf32>, vector<128x128xf32> -> vector<128x128xf32>
    %c0_3 = arith.constant 0 : index
    %c0_4 = arith.constant 0 : index
    %3 = vector.load %arg3[%c0_3, %c0_4] : memref<128x1xf32, #tpu.memory_space<vmem>>, vector<128x1xf32>
    %4 = vector.broadcast %3 : vector<128x1xf32> to vector<128x128xf32>
    %5 = arith.addf %2, %4 : vector<128x128xf32>
    %cst_5 = arith.constant 0.000000e+00 : f32
    %6 = vector.broadcast %cst_5 : f32 to vector<128x128xf32>
    %7 = arith.maximumf %5, %6 : vector<128x128xf32>
    %c0_6 = arith.constant 0 : index
    %c0_7 = arith.constant 0 : index
    %8 = vector.load %arg4[%c0_6, %c0_7] : memref<32x128xf32, #tpu.memory_space<vmem>>, vector<32x128xf32>
    %cst_8 = arith.constant dense<0.000000e+00> : vector<32x128xf32>
    %9 = tpu.matmul %8, %7, %cst_8 {dimension_numbers = #tpu.dot_dimension_numbers<[1], [0], [0], [1], [0, 0, 1, 1], [], []>} : vector<32x128xf32>, vector<128x128xf32>, vector<32x128xf32> -> vector<32x128xf32>
    %c0_9 = arith.constant 0 : index
    %c0_10 = arith.constant 0 : index
    %10 = vector.load %arg5[%c0_9, %c0_10] : memref<32x1xf32, #tpu.memory_space<vmem>>, vector<32x1xf32>
    %11 = vector.broadcast %10 : vector<32x1xf32> to vector<32x128xf32>
    %12 = arith.addf %9, %11 : vector<32x128xf32>
    %cst_11 = arith.constant 0.000000e+00 : f32
    %13 = vector.broadcast %cst_11 : f32 to vector<32x128xf32>
    %14 = arith.maximumf %12, %13 : vector<32x128xf32>
    %c0_12 = arith.constant 0 : index
    %c0_13 = arith.constant 0 : index
    %15 = vector.load %arg6[%c0_12, %c0_13] : memref<1x32xf32, #tpu.memory_space<vmem>>, vector<1x32xf32>
    %cst_14 = arith.constant dense<0.000000e+00> : vector<1x128xf32>
    %16 = tpu.matmul %15, %14, %cst_14 {dimension_numbers = #tpu.dot_dimension_numbers<[1], [0], [0], [1], [0, 0, 1, 1], [], []>} : vector<1x32xf32>, vector<32x128xf32>, vector<1x128xf32> -> vector<1x128xf32>
    %c0_15 = arith.constant 0 : index
    %c0_16 = arith.constant 0 : index
    %17 = vector.load %arg7[%c0_15, %c0_16] : memref<1x1xf32, #tpu.memory_space<vmem>>, vector<1x1xf32>
    %18 = vector.broadcast %17 : vector<1x1xf32> to vector<1x128xf32>
    %19 = arith.addf %16, %18 : vector<1x128xf32>
    %c0_17 = arith.constant 0 : index
    %c0_18 = arith.constant 0 : index
    %20 = vector.load %arg8[%c0_17, %c0_18] : memref<1x128xf32, #tpu.memory_space<vmem>>, vector<1x128xf32>
    tpu.vector_store %arg8[%c0_17, %c0_18], %19 {strides = array<i32>} : memref<1x128xf32, #tpu.memory_space<vmem>>, vector<1x128xf32>,
    return
  }
  func.func @transform_0(%arg0: i32) -> (i32, i32) {
    %c0_i32 = arith.constant 0 : i32
    %c0_i32_0 = arith.constant 0 : i32
    return %c0_i32, %arg0 : i32, i32
  }
  func.func @transform_1(%arg0: i32) -> (i32, i32) {
    %c0_i32 = arith.constant 0 : i32
    %c0_i32_0 = arith.constant 0 : i32
    %c0_i32_1 = arith.constant 0 : i32
    return %c0_i32, %c0_i32_0 : i32, i32
  }
  func.func @transform_2(%arg0: i32) -> (i32, i32) {
    %c0_i32 = arith.constant 0 : i32
    %c0_i32_0 = arith.constant 0 : i32
    %c0_i32_1 = arith.constant 0 : i32
    return %c0_i32, %c0_i32_0 : i32, i32
  }
  func.func @transform_3(%arg0: i32) -> (i32, i32) {
    %c0_i32 = arith.constant 0 : i32
    %c0_i32_0 = arith.constant 0 : i32
    %c0_i32_1 = arith.constant 0 : i32
    return %c0_i32, %c0_i32_0 : i32, i32
  }
  func.func @transform_4(%arg0: i32) -> (i32, i32) {
    %c0_i32 = arith.constant 0 : i32
    %c0_i32_0 = arith.constant 0 : i32
    %c0_i32_1 = arith.constant 0 : i32
    return %c0_i32, %c0_i32_0 : i32, i32
  }
  func.func @transform_5(%arg0: i32) -> (i32, i32) {
    %c0_i32 = arith.constant 0 : i32
    %c0_i32_0 = arith.constant 0 : i32
    %c0_i32_1 = arith.constant 0 : i32
    return %c0_i32, %c0_i32_0 : i32, i32
  }
  func.func @transform_6(%arg0: i32) -> (i32, i32) {
    %c0_i32 = arith.constant 0 : i32
    %c0_i32_0 = arith.constant 0 : i32
    %c0_i32_1 = arith.constant 0 : i32
    return %c0_i32, %c0_i32_0 : i32, i32
  }
  func.func @transform_7(%arg0: i32) -> (i32, i32) {
    %c0_i32 = arith.constant 0 : i32
    %c0_i32_0 = arith.constant 0 : i32
    return %c0_i32, %arg0 : i32, i32
  }
}

</mosaic_0001>

<bundles_post_ra>
// kernel: critic_forward.1
= control target key start
LH: loop header
LB: loop body
LE: loop exit
PB: predicated region body
PF: predicated region fallthrough
CT: control target
= control target key end

     0   :  { %vm190_vm0 = vcmask 1043456   ;;  %vm141_vm1 = vcmask 31744   ;;  %v741_v3 = vmov 0   ;;  %vm743_vm2 = vmmov 0   ;;  %s933_s0 = inlined_call_operand.vmem [shape: f32[4,128], index: 0, kind: input, shape index: {}]   ;;  %s934_s1 = inlined_call_operand.vmem [shape: f32[128,4], index: 1, kind: input, shape index: {}]   ;;  %s935_s6 = inlined_call_operand.<no memory space> [shape: f32[1,1], index: 6, kind: input, shape index: {}]   ;;  %s936_s2 = inlined_call_operand.vmem [shape: f32[128,1], index: 2, kind: input, shape index: {}]   ;;  %s937_s4 = inlined_call_operand.vmem [shape: f32[32,1], index: 4, kind: input, shape index: {}]   ;;  %s938_s3 = inlined_call_operand.vmem [shape: f32[32,128], index: 3, kind: input, shape index: {}]   ;;  %s939_s5 = inlined_call_operand.vmem [shape: f32[1,32], index: 5, kind: input, shape index: {}]   ;;  %s940_s7 = inlined_call_operand.vmem [shape: f32[1,128], index: 7, kind: output, shape index: {}]  }
   0x1   :  { %v44_v0 = vld [vmem:[%s933_s0] sm:$0xf]  ;;  %v29_v2 = vld [vmem:[%s934_s1 + $0x8] sm:$0xff]  ;;  %739 = vset.pattern.permute.xlu0 %v741_v3  ;;  %740 = vset.pattern.permute.xlu1 %v741_v3  ;;  %v12_v4 = vstv %s935_s6  ;;  %v30_v5 = vld [vmem:[%s934_s1 + $0x10] sm:$0xff]  ;;  %vm483_vm3 = vcmask 261120  }
   0x2   :  { %v28_v1 = vld [vmem:[%s934_s1] sm:$0xff]  ;;  %622 = vmatprep.subr.msk.mxu0 %vm190_vm0, %v44_v0  ;;  %13 = vst [vmem:[#allocation2] sm:$0x1] %v12_v4  ;;  %v31_v6 = vld [vmem:[%s934_s1 + $0x18] sm:$0xff]  ;;  %v47_v9 = vld [vmem:[%s936_s2 + $0x10] sm:$0xff] }
   0x3   :  { %624 = vmatprep.mubr.msk.f32.mxu0 %vm141_vm1, %v28_v1  ;;  %623 = vmatpush3.msk.msra.mxu0 %vm190_vm0, %v44_v0  ;;  %v32_v7 = vld [vmem:[%s934_s1 + $0x20] sm:$0xff]  ;;  %v46_v10 = vld [vmem:[%s936_s2 + $0x8] sm:$0xff]  ;;  %v48_v12 = vld [vmem:[%s936_s2 + $0x18] sm:$0xff] }
   0x4   :  { %625 = vmatmul.mubr.msk.f32.vlgmr.msra.gmra.mrb[0].mxu0 %vm141_vm1, %v29_v2  ;;  %v45_v8 = vld [vmem:[%s936_s2] sm:$0xff]  ;;  %73 = vperm.xlu1 %740, %v47_v9   ;;  %v33_v11 = vld [vmem:[%s934_s1 + $0x28] sm:$0xff]  ;;  %v34_v13 = vld [vmem:[%s934_s1 + $0x30] sm:$0xff] }
   0x5   :  { %627 = vmatprep.mubr.msk.f32.mxu0 %vm141_vm1, %v30_v5  ;;  %63 = vperm.xlu0 %739, %v45_v8   ;;  %v49_v14 = vld [vmem:[%s936_s2 + $0x20] sm:$0xff]  ;;  %v35_v15 = vld [vmem:[%s934_s1 + $0x38] sm:$0xff]  ;;  %v50_v16 = vld [vmem:[%s936_s2 + $0x28] sm:$0xff] }
   0x6   :  { %v36_v17 = vld [vmem:[%s934_s1 + $0x40] sm:$0xff]  ;;  %v51_v18 = vld [vmem:[%s936_s2 + $0x30] sm:$0xff]  ;;  %v37_v19 = vld [vmem:[%s934_s1 + $0x48] sm:$0xff] }
   0x7   :  { %v52_v20 = vld [vmem:[%s936_s2 + $0x38] sm:$0xff]  ;;  %v38_v21 = vld [vmem:[%s934_s1 + $0x50] sm:$0xff]  ;;  %v53_v22 = vld [vmem:[%s936_s2 + $0x40] sm:$0xff] }
   0x8   :  { %628 = vmatmul.mubr.msk.f32.gmra.mrb[2].mxu0 %vm141_vm1, %v31_v6  ;;  %78 = vperm.xlu1 %740, %v48_v12   ;;  %v39_v23 = vld [vmem:[%s934_s1 + $0x58] sm:$0xff]  ;;  %v54_v24 = vld [vmem:[%s936_s2 + $0x48] sm:$0xff]  ;;  %v40_v25 = vld [vmem:[%s934_s1 + $0x60] sm:$0xff] }
   0x9   :  { %630 = vmatprep.mubr.msk.f32.mxu0 %vm141_vm1, %v32_v7  ;;  %68 = vperm.xlu0 %739, %v46_v10   ;;  %v55_v26 = vld [vmem:[%s936_s2 + $0x50] sm:$0xff]  ;;  %v41_v27 = vld [vmem:[%s934_s1 + $0x68] sm:$0xff]  ;;  %v56_v28 = vld [vmem:[%s936_s2 + $0x58] sm:$0xff] }
   0xa   :  { %v42_v29 = vld [vmem:[%s934_s1 + $0x70] sm:$0xff]  ;;  %v57_v30 = vld [vmem:[%s936_s2 + $0x60] sm:$0xff]  ;;  %v43_v31 = vld [vmem:[%s934_s1 + $0x78] sm:$0xff] }
   0xb   :  { %v58_v32 = vld [vmem:[%s936_s2 + $0x68] sm:$0xff]  ;;  %v59_v33 = vld [vmem:[%s936_s2 + $0x70] sm:$0xff]  ;;  %v60_v34 = vld [vmem:[%s936_s2 + $0x78] sm:$0xff] }
   0xc   :  { %631 = vmatmul.mubr.msk.f32.gmra.mrb[4].mxu0 %vm141_vm1, %v33_v11  ;;  %88 = vperm.xlu1 %740, %v50_v16   ;;  %v359_v35 = vld [vmem:[%s937_s4] sm:$0xff]  ;;  %v360_v36 = vld [vmem:[%s937_s4 + $0x8] sm:$0xff]  ;;  %v361_v37 = vld [vmem:[%s937_s4 + $0x10] sm:$0xff] }
   0xd   :  { %633 = vmatprep.mubr.msk.f32.mxu0 %vm141_vm1, %v34_v13  ;;  %83 = vperm.xlu0 %739, %v49_v14   ;;  %v362_v38 = vld [vmem:[%s937_s4 + $0x18] sm:$0xff]  ;;  %v473_v39 = vld [vmem:[#allocation2] sm:$0x1] }
   0xe   :  { %v355_v40 = vld [vmem:[%s938_s3] sm:$0xff] }
   0xf   :  { %680 = vmatprep.mubr.f32.mxu1 %v355_v40 }
  0x10   :  { %634 = vmatmul.mubr.msk.f32.gmra.mrb[6].mxu0 %vm141_vm1, %v35_v15  ;;  %98 = vperm.xlu1 %740, %v52_v20  }
  0x11   :  { %636 = vmatprep.mubr.msk.f32.mxu0 %vm141_vm1, %v36_v17  ;;  %93 = vperm.xlu0 %739, %v51_v18  }
  0x14   :  { %637 = vmatmul.mubr.msk.f32.gmra.mrb[8].mxu0 %vm141_vm1, %v37_v19  ;;  %108 = vperm.xlu1 %740, %v54_v24  }
  0x15   :  { %639 = vmatprep.mubr.msk.f32.mxu0 %vm141_vm1, %v38_v21  ;;  %103 = vperm.xlu0 %739, %v53_v22  }
  0x18   :  { %640 = vmatmul.mubr.msk.f32.gmra.mrb[10].mxu0 %vm141_vm1, %v39_v23  ;;  %118 = vperm.xlu1 %740, %v56_v28  }
  0x19   :  { %642 = vmatprep.mubr.msk.f32.mxu0 %vm141_vm1, %v40_v25  ;;  %113 = vperm.xlu0 %739, %v55_v26  }
  0x1c   :  { %643 = vmatmul.mubr.msk.f32.gmra.mrb[12].mxu0 %vm141_vm1, %v41_v27  ;;  %128 = vperm.xlu1 %740, %v58_v32  }
  0x1d   :  { %645 = vmatprep.mubr.msk.f32.mxu0 %vm141_vm1, %v42_v29  ;;  %123 = vperm.xlu0 %739, %v57_v30  }
  0x20   :  { %646 = vmatmul.mubr.msk.f32.gmra.mrb[14].mxu0 %vm141_vm1, %v43_v31  ;;  %138 = vperm.xlu1 %740, %v60_v34  }
  0x21   :  { %133 = vperm.xlu0 %739, %v59_v33  }
  0x24   :  { %370 = vperm.xlu1 %740, %v360_v36  }
  0x25   :  { %365 = vperm.xlu0 %739, %v359_v35  }
  0x28   :  { %380 = vperm.xlu1 %740, %v362_v38  }
  0x29   :  { %375 = vperm.xlu0 %739, %v361_v37  }
  0x2d   :  { %476 = vperm.xlu0 %739, %v473_v39  }
  0x83   :  { %v74_v41 = vpop.permute.xlu1 %73 }
  0x84   :  { %v64_v42 = vpop.permute.xlu0 %63 }
  0x87   :  { %v79_v43 = vpop.permute.xlu1 %78 }
  0x88   :  { %v69_v44 = vpop.permute.xlu0 %68 }
  0x8b   :  { %v89_v45 = vpop.permute.xlu1 %88 }
  0x8c   :  { %v84_v46 = vpop.permute.xlu0 %83 }
  0x8f   :  { %v99_v52 = vpop.permute.xlu1 %98 }
  0x90   :  { %v94_v55 = vpop.permute.xlu0 %93 }
  0x93   :  { %v109_v1 = vpop.permute.xlu1 %108 }
  0x94   :  { %v104_v4 = vpop.permute.xlu0 %103 }
  0x97   :  { %v119_v13 = vpop.permute.xlu1 %118 }
  0x98   :  { %v114_v16 = vpop.permute.xlu0 %113 }
  0x9b   :  { %v129_v26 = vpop.permute.xlu1 %128 }
  0x9c   :  { %v124_v29 = vpop.permute.xlu0 %123 }
  0x9f   :  { %v139_v38 = vpop.permute.xlu1 %138 }
  0xd7   :  { %v626_v47 = vpop.f32.mrb[0].mxu0 }
  0xd8   :  { %v266_v48 = vadd.f32 %v626_v47, %v69_v44  ;;  %v260_v49 = vpop.f32.mrb[1].mxu0 }
  0xd9   :  { %v261_v50 = vadd.f32 %v260_v49, %v64_v42  ;;  %v356_v49 = vld [vmem:[%s938_s3 + $0x8] sm:$0xff] }
  0xda   :  { %v340_v51 = vmax.f32 %v266_v48, 0.0 }
  0xdb   :  { %v339_v53 = vmax.f32 %v261_v50, 0.0  ;;  %v629_v54 = vpop.f32.mrb[2].mxu0  ;;  %v357_v50 = vld [vmem:[%s938_s3 + $0x10] sm:$0xff] }
  0xdc   :  { %v276_v56 = vadd.f32 %v629_v54, %v79_v43  ;;  %v270_v57 = vpop.f32.mrb[3].mxu0  ;;  %v371_v54 = vpop.permute.xlu1 %370 }
  0xdd   :  { %v271_v58 = vadd.f32 %v270_v57, %v74_v41  ;;  %v697_v59 = vpack.c.bf16 %v340_v51, %v339_v53  ;;  %v134_v41 = vpop.permute.xlu0 %133  ;;  %v358_v51 = vld [vmem:[%s938_s3 + $0x18] sm:$0xff]  ;;  %v744_v53 = vmov 0.0  }
  0xde   :  { %v342_v60 = vmax.f32 %v276_v56, 0.0  ;;  %694 = vmatprep.mubr.msk.f32.mxu0 %vm743_vm2, %v744_v53 }
  0xdf   :  { %v341_v61 = vmax.f32 %v271_v58, 0.0  ;;  %v632_v62 = vpop.f32.mrb[4].mxu0  ;;  %698 = vmatprep.subr.bf16.mxu1 %v697_v59 }
  0xe0   :  { %v286_v63 = vadd.f32 %v632_v62, %v89_v45  ;;  %v280_v0 = vpop.f32.mrb[5].mxu0  ;;  %700 = vmatpush3.bf16.msra.mxu1 %v697_v59 }
  0xe1   :  { %v701_v2 = vpack.c.bf16 %v342_v60, %v341_v61  ;;  %v281_v3 = vadd.f32 %v280_v0, %v84_v46  ;;  %v381_v61 = vpop.permute.xlu1 %380 }
  0xe2   :  { %v344_v5 = vmax.f32 %v286_v63, 0.0 }
  0xe3   :  { %v343_v6 = vmax.f32 %v281_v3, 0.0  ;;  %v635_v7 = vpop.f32.mrb[6].mxu0  ;;  %702 = vmatprep.subr.bf16.mxu1 %v701_v2 }
  0xe4   :  { %v296_v8 = vadd.f32 %v635_v7, %v99_v52  ;;  %v290_v9 = vpop.f32.mrb[7].mxu0  ;;  %704 = vmatpush3.bf16.msra.mxu1 %v701_v2  ;;  %v742_v52 = vmov 0.0|0.0  }
  0xe5   :  { %v705_v10 = vpack.c.bf16 %v344_v5, %v343_v6  ;;  %v291_v11 = vadd.f32 %v290_v9, %v94_v55  ;;  %729 = vmatprep.subr.bf16.mxu0 %v742_v52  ;;  %v366_v55 = vpop.permute.xlu0 %365  ;;  %v479_v9 = vlaneseq }
  0xe6   :  { %v346_v12 = vmax.f32 %v296_v8, 0.0  ;;  %v472_v8 = vld [vmem:[%s939_s5] sm:$0x1] }
  0xe7   :  { %v345_v14 = vmax.f32 %v291_v11, 0.0  ;;  %v638_v15 = vpop.f32.mrb[8].mxu0  ;;  %706 = vmatprep.subr.bf16.mxu1 %v705_v10 }
  0xe8   :  { %v306_v17 = vadd.f32 %v638_v15, %v109_v1  ;;  %v300_v18 = vpop.f32.mrb[9].mxu0  ;;  %708 = vmatpush3.bf16.msra.mxu1 %v705_v10  ;;  %v480_v10 = vshrl.u32 %v479_v9, 7 }
  0xe9   :  { %v709_v19 = vpack.c.bf16 %v346_v12, %v345_v14  ;;  %v301_v20 = vadd.f32 %v300_v18, %v104_v4  ;;  %v376_v0 = vpop.permute.xlu0 %375 }
  0xea   :  { %v348_v21 = vmax.f32 %v306_v17, 0.0  ;;  %v481_v11 = vsub.s32 0, %v480_v10 }
  0xeb   :  { %v347_v22 = vmax.f32 %v301_v20, 0.0  ;;  %v641_v23 = vpop.f32.mrb[10].mxu0  ;;  %710 = vmatprep.subr.bf16.mxu1 %v709_v19 }
  0xec   :  { %v316_v24 = vadd.f32 %v641_v23, %v119_v13  ;;  %v310_v25 = vpop.f32.mrb[11].mxu0  ;;  %712 = vmatpush3.bf16.msra.mxu1 %v709_v19 }
  0xed   :  { %v713_v27 = vpack.c.bf16 %v348_v21, %v347_v22  ;;  %v311_v28 = vadd.f32 %v310_v25, %v114_v16  ;;  %v477_v12 = vpop.permute.xlu0 %476 }
  0xee   :  { %v350_v30 = vmax.f32 %v316_v24, 0.0  ;;  %v482_v13 = vrot.slane %v477_v12, %v481_v11 }
  0xef   :  { %v349_v31 = vmax.f32 %v311_v28, 0.0  ;;  %v644_v32 = vpop.f32.mrb[12].mxu0  ;;  %714 = vmatprep.subr.bf16.mxu1 %v713_v27 }
  0xf0   :  { %v326_v33 = vadd.f32 %v644_v32, %v129_v26  ;;  %v320_v34 = vpop.f32.mrb[13].mxu0  ;;  %716 = vmatpush3.bf16.msra.mxu1 %v713_v27 }
  0xf1   :  { %v717_v35 = vpack.c.bf16 %v350_v30, %v349_v31  ;;  %v321_v36 = vadd.f32 %v320_v34, %v124_v29 }
  0xf2   :  { %v352_v37 = vmax.f32 %v326_v33, 0.0 }
  0xf3   :  { %v351_v39 = vmax.f32 %v321_v36, 0.0  ;;  %v647_v40 = vpop.f32.mrb[14].mxu0  ;;  %718 = vmatprep.subr.bf16.mxu1 %v717_v35 }
  0xf4   :  { %v336_v42 = vadd.f32 %v647_v40, %v139_v38  ;;  %v330_v43 = vpop.f32.mrb[15].mxu0  ;;  %720 = vmatpush3.bf16.msra.mxu1 %v717_v35 }
  0xf5   :  { %v721_v44 = vpack.c.bf16 %v352_v37, %v351_v39  ;;  %v331_v45 = vadd.f32 %v330_v43, %v134_v41 }
  0xf6   :  { %v354_v46 = vmax.f32 %v336_v42, 0.0 }
  0xf7   :  { %v353_v47 = vmax.f32 %v331_v45, 0.0  ;;  %722 = vmatprep.subr.bf16.mxu1 %v721_v44 }
  0xf8   :  { %724 = vmatpush3.bf16.msra.mxu1 %v721_v44 }
  0xf9   :  { %v725_v48 = vpack.c.bf16 %v354_v46, %v353_v47 }
  0xfb   :  { %726 = vmatprep.subr.bf16.mxu1 %v725_v48 }
  0xfc   :  { %728 = vmatpush3.bf16.msra.mxu1 %v725_v48 }
  0xff   :  { %681 = vmatmul.mubr.f32.vlgmr.msra.gmra.mrb[0].mxu1 %v356_v49 }
 0x100   :  { %683 = vmatprep.mubr.f32.mxu1 %v357_v50 }
 0x103   :  { %684 = vmatmul.mubr.f32.gmra.mrb[2].mxu1 %v358_v51 }
 0x1d2   :  { %v682_v56 = vpop.f32.mrb[0].mxu1 }
 0x1d3   :  { %v455_v57 = vadd.f32 %v682_v56, %v371_v54  ;;  %v449_v58 = vpop.f32.mrb[1].mxu1 }
 0x1d4   :  { %v450_v59 = vadd.f32 %v449_v58, %v366_v55 }
 0x1d5   :  { %v469_v60 = vmax.f32 %v455_v57, 0.0 }
 0x1d6   :  { %v468_v62 = vmax.f32 %v450_v59, 0.0  ;;  %v685_v63 = vpop.f32.mrb[2].mxu1 }
 0x1d7   :  { %v465_v1 = vadd.f32 %v685_v63, %v381_v61  ;;  %v459_v2 = vpop.f32.mrb[3].mxu1 }
 0x1d8   :  { %v730_v3 = vpack.c.bf16 %v469_v60, %v468_v62  ;;  %v460_v4 = vadd.f32 %v459_v2, %v376_v0 }
 0x1d9   :  { %v471_v5 = vmax.f32 %v465_v1, 0.0 }
 0x1da   :  { %v470_v6 = vmax.f32 %v460_v4, 0.0  ;;  %731 = vmatpush3.bf16.msra.mxu0 %v730_v3 }
 0x1db   :  { %732 = vmatprep.subr.bf16.mxu0 %v742_v52 }
 0x1dc   :  { %v733_v7 = vpack.c.bf16 %v471_v5, %v470_v6 }
 0x1de   :  { %734 = vmatpush3.bf16.msra.mxu0 %v733_v7 }
 0x1e1   :  { %695 = vmatmul.mubr.msk.f32.vlgmr.msra.gmra.mrb[16].mxu0 %vm483_vm3, %v472_v8 }
 0x2b4   :  { %v553_v14 = vpop.f32.mrb[16].mxu0 }
 0x2b5   :  { %v554_v15 = vadd.f32 %v553_v14, %v482_v13  ;;  %v696_v16 = vpop.f32.mrb[17].mxu0 }
 0x2b7   :  { %557 = vst [vmem:[%s940_s7] sm:$0x1] %v554_v15 }

</bundles_post_ra>
